<compile_context>
chip_gen: v5e
topology: v5e:2x2
jax: 0.10.0
libtpu: 0.0.40
codegen_flags: <defaults>
</compile_context>

<pallas_src>
import math

import jax
import jax.numpy as jnp
from jax.experimental import pallas as pl
from jax.experimental.pallas import tpu as pltpu


# --------------------------------------------------------------------------
# Collapsed kernel: one grid step, all batches stacked as rows.
#   rows_out = relu(((GF @ Wv_fam + bv_fam) @ Wv_arm + bv_arm) @ We' + be')
# --------------------------------------------------------------------------
def gem_collapsed_kernel(gf_ref, w_ref, b_ref, out_ref):
    D = gf_ref.shape[1]
    gf = gf_ref[...]                                           # (B, D) unique global rows

    # FAM collapses to its value projection of the global row.
    v1 = jnp.dot(gf, w_ref[0:D, :],
                 preferred_element_type=jnp.float32) + b_ref[0:1, :]
    # ARM collapses to its value projection of that row.
    v2 = jnp.dot(v1, w_ref[D:2 * D, :],
                 preferred_element_type=jnp.float32) + b_ref[1:2, :]
    # edge_proj: relu(x @ We' + be'), eval-BN folded into We'/be'.
    e = jnp.dot(v2, w_ref[2 * D:3 * D, :],
                preferred_element_type=jnp.float32) + b_ref[2:3, :]

    out_ref[...] = jnp.maximum(e, 0.0)                         # (B, D) unique rows only


# --------------------------------------------------------------------------
# Wrapper: trace-time weight prep + single pallas_call + free broadcast/reshape
# --------------------------------------------------------------------------
def gem_forward(params, class_feature, global_feature):
    B, N, D = class_feature.shape
    fam, arm, edge = params["fam"], params["arm"], params["edge"]

    # Fold eval-mode BN into the edge projection.
    we = edge["w"] * edge["bn_scale"]                          # (D, D)
    be = edge["b"] * edge["bn_scale"] + edge["bn_bias"]        # (1, D)

    # One weight tensor, one bias tensor (static slices in-kernel are free).
    wcat = jnp.concatenate([fam["wv"], arm["wv"], we], axis=0)   # (3D, D)
    bcat = jnp.concatenate([fam["bv"], arm["bv"], be], axis=0)   # (3, D)

    gf = jnp.reshape(global_feature, (B, D))                     # unique global rows

    rows = pl.pallas_call(
        gem_collapsed_kernel,
        out_shape=jax.ShapeDtypeStruct((B, D), jnp.float32),
        grid=(1,),
        in_specs=[
            pl.BlockSpec((B, D), lambda i: (0, 0)),              # global rows
            pl.BlockSpec((3 * D, D), lambda i: (0, 0)),          # fused weights
            pl.BlockSpec((3, D), lambda i: (0, 0)),              # fused biases
        ],
        out_specs=pl.BlockSpec((B, D), lambda i: (0, 0)),
        # Single step: deliberately no 'parallel' megacore split (review opt #8);
        # per-step work is sub-microsecond and overhead-bound, not slot-bound.
        compiler_params=pltpu.CompilerParams(
            dimension_semantics=("arbitrary",)),
    )(gf, wcat, bcat)

    # N*N-fold tiling of the unique per-batch row happens outside the kernel so it
    # can fuse into the consumer; no redundant HBM writeback from the kernel.
    return jnp.broadcast_to(rows[:, None, :], (B, N * N, D))


# --------------------------------------------------------------------------
# Deterministic parameter init (mirrors shapes / init dists of the PyTorch module)
# --------------------------------------------------------------------------
def _make_linear(key, in_f, out_f, std):
    kw, kb = jax.random.split(key)
    w = jax.random.normal(kw, (out_f, in_f), jnp.float32) * std      # torch (out, in)
    bound = 1.0 / math.sqrt(in_f)
    b = jax.random.uniform(kb, (1, out_f), jnp.float32, -bound, bound)
    return w.T, b                                                     # stored as (in, out)


def _make_cross_attn(key, D):
    Dh = D // 2
    kq, kk, kv = jax.random.split(key, 3)
    wq, bq = _make_linear(kq, D, Dh, math.sqrt(2.0 / Dh))
    wk, bk = _make_linear(kk, D, Dh, math.sqrt(2.0 / Dh))
    wv, bv = _make_linear(kv, D, D, math.sqrt(2.0 / D))
    return dict(wq=wq, bq=bq, wk=wk, bk=bk, wv=wv, bv=bv)


def init_params(key, D):
    k_fam, k_arm, k_edge = jax.random.split(key, 3)
    w, b = _make_linear(k_edge, D, D, math.sqrt(2.0 / D))
    eps = 1e-5
    edge = dict(
        w=w, b=b,
        bn_scale=jnp.full((1, D), 1.0 / math.sqrt(1.0 + eps), jnp.float32),
        bn_bias=jnp.zeros((1, D), jnp.float32),
    )
    return dict(fam=_make_cross_attn(k_fam, D),
                arm=_make_cross_attn(k_arm, D),
                edge=edge)


# --------------------------------------------------------------------------
# Pure-JAX reference: the ORIGINAL, unreduced computation (explicit q/k/v in both
# CrossAttn blocks, explicit feat_start/feat_end tiling, unfused BN).  Validates
# every algebraic reduction used in the kernel.
# --------------------------------------------------------------------------
def _cross_attn_ref(y, x, p):
    Dh = p["wq"].shape[1]
    q = y @ p["wq"] + p["bq"]
    k = x @ p["wk"] + p["bk"]
    v = x @ p["wv"] + p["bv"]
    dots = jnp.einsum("bmd,bnd->bmn", q, k) * (float(Dh) ** -0.5)
    attn = jax.nn.softmax(dots, axis=-1)
    return jnp.einsum("bmn,bnd->bmd", attn, v)


def gem_reference(params, class_feature, global_feature):
    B, N, D = class_feature.shape
    g_rep = jnp.broadcast_to(global_feature, (B, N, D))
    feat = _cross_attn_ref(class_feature, g_rep, params["fam"])
    feat_end = jnp.reshape(jnp.broadcast_to(feat[:, :, None, :], (B, N, N, D)),
                           (B, N * N, D))
    feat_start = jnp.reshape(jnp.broadcast_to(feat[:, None, :, :], (B, N, N, D)),
                             (B, N * N, D))
    feat2 = _cross_attn_ref(feat_start, feat_end, params["arm"])
    p = params["edge"]
    y = feat2 @ p["w"] + p["b"]
    y = y * p["bn_scale"] + p["bn_bias"]
    return jnp.maximum(y, 0.0)


# --------------------------------------------------------------------------
if __name__ == "__main__":
    B, N, D = 2, 8, 32           # class_feature: (B, N, D); global_feature: (B, 1, D)

    key = jax.random.PRNGKey(0)
    k_cf, k_gf, k_p = jax.random.split(key, 3)
    class_feature = jax.random.normal(k_cf, (B, N, D), jnp.float32)
    global_feature = jax.random.normal(k_gf, (B, 1, D), jnp.float32)
    params = init_params(k_p, D)

    edge = jax.jit(gem_forward)(params, class_feature, global_feature)
    edge = jax.block_until_ready(edge)

    assert edge.shape == (B, N * N, D), edge.shape
    ref = gem_reference(params, class_feature, global_feature)
    # f32 everywhere; tolerance covers MXU f32 multi-pass + BN-fold / softmax-collapse
    # reassociation (all exact in real arithmetic).
    assert jnp.allclose(edge, ref, atol=2e-4, rtol=2e-4), float(jnp.max(jnp.abs(edge - ref)))

    print("KERNEL_OK")
</pallas_src>

<mosaic_0001>
module attributes {stable_mosaic.version = 11 : i64} {
  func.func @gem_collapsed_kernel(%arg0: i32, %arg1: memref<2x32xf32, #tpu.memory_space<vmem>>, %arg2: memref<96x32xf32, #tpu.memory_space<vmem>>, %arg3: memref<3x32xf32, #tpu.memory_space<vmem>>, %arg4: memref<2x32xf32, #tpu.memory_space<vmem>>) attributes {dimension_semantics = [#tpu.dimension_semantics<arbitrary>], iteration_bounds = array<i64: 1>, scalar_prefetch = 0 : i64, scratch_operands = 0 : i64, tpu.core_type = #tpu.core_type<tc>, window_params = [{pipeline_mode = #tpu.pipeline_mode<synchronous>, transform_indices = @transform_0, window_bounds = array<i64: 2, 32>}, {pipeline_mode = #tpu.pipeline_mode<synchronous>, transform_indices = @transform_1, window_bounds = array<i64: 96, 32>}, {pipeline_mode = #tpu.pipeline_mode<synchronous>, transform_indices = @transform_2, window_bounds = array<i64: 3, 32>}, {pipeline_mode = #tpu.pipeline_mode<synchronous>, transform_indices = @transform_3, window_bounds = array<i64: 2, 32>}]} {
    %c0 = arith.constant 0 : index
    %c0_0 = arith.constant 0 : index
    %0 = vector.load %arg1[%c0, %c0_0] : memref<2x32xf32, #tpu.memory_space<vmem>>, vector<2x32xf32>
    %c0_1 = arith.constant 0 : index
    %c0_2 = arith.constant 0 : index
    %1 = vector.load %arg2[%c0_1, %c0_2] : memref<96x32xf32, #tpu.memory_space<vmem>>, vector<32x32xf32>
    %cst = arith.constant dense<0.000000e+00> : vector<2x32xf32>
    %2 = tpu.matmul %0, %1, %cst {dimension_numbers = #tpu.dot_dimension_numbers<[1], [0], [0], [1], [0, 0, 1, 1], [], []>} : vector<2x32xf32>, vector<32x32xf32>, vector<2x32xf32> -> vector<2x32xf32>
    %c0_3 = arith.constant 0 : index
    %c0_4 = arith.constant 0 : index
    %3 = vector.load %arg3[%c0_3, %c0_4] : memref<3x32xf32, #tpu.memory_space<vmem>>, vector<1x32xf32>
    %4 = vector.broadcast %3 : vector<1x32xf32> to vector<2x32xf32>
    %5 = arith.addf %2, %4 : vector<2x32xf32>
    %c32 = arith.constant 32 : index
    %c0_5 = arith.constant 0 : index
    %6 = vector.load %arg2[%c32, %c0_5] : memref<96x32xf32, #tpu.memory_space<vmem>>, vector<32x32xf32>
    %cst_6 = arith.constant dense<0.000000e+00> : vector<2x32xf32>
    %7 = tpu.matmul %5, %6, %cst_6 {dimension_numbers = #tpu.dot_dimension_numbers<[1], [0], [0], [1], [0, 0, 1, 1], [], []>} : vector<2x32xf32>, vector<32x32xf32>, vector<2x32xf32> -> vector<2x32xf32>
    %c1 = arith.constant 1 : index
    %c0_7 = arith.constant 0 : index
    %8 = vector.load %arg3[%c1, %c0_7] : memref<3x32xf32, #tpu.memory_space<vmem>>, vector<1x32xf32>
    %9 = vector.broadcast %8 : vector<1x32xf32> to vector<2x32xf32>
    %10 = arith.addf %7, %9 : vector<2x32xf32>
    %c64 = arith.constant 64 : index
    %c0_8 = arith.constant 0 : index
    %11 = vector.load %arg2[%c64, %c0_8] : memref<96x32xf32, #tpu.memory_space<vmem>>, vector<32x32xf32>
    %cst_9 = arith.constant dense<0.000000e+00> : vector<2x32xf32>
    %12 = tpu.matmul %10, %11, %cst_9 {dimension_numbers = #tpu.dot_dimension_numbers<[1], [0], [0], [1], [0, 0, 1, 1], [], []>} : vector<2x32xf32>, vector<32x32xf32>, vector<2x32xf32> -> vector<2x32xf32>
    %c2 = arith.constant 2 : index
    %c0_10 = arith.constant 0 : index
    %13 = vector.load %arg3[%c2, %c0_10] : memref<3x32xf32, #tpu.memory_space<vmem>>, vector<1x32xf32>
    %14 = vector.broadcast %13 : vector<1x32xf32> to vector<2x32xf32>
    %15 = arith.addf %12, %14 : vector<2x32xf32>
    %cst_11 = arith.constant 0.000000e+00 : f32
    %16 = vector.broadcast %cst_11 : f32 to vector<2x32xf32>
    %17 = arith.maximumf %15, %16 : vector<2x32xf32>
    %c0_12 = arith.constant 0 : index
    %c0_13 = arith.constant 0 : index
    %18 = vector.load %arg4[%c0_12, %c0_13] : memref<2x32xf32, #tpu.memory_space<vmem>>, vector<2x32xf32>
    tpu.vector_store %arg4[%c0_12, %c0_13], %17 {strides = array<i32>} : memref<2x32xf32, #tpu.memory_space<vmem>>, vector<2x32xf32>,
    return
  }
  func.func @transform_0(%arg0: i32) -> (i32, i32) {
    %c0_i32 = arith.constant 0 : i32
    %c0_i32_0 = arith.constant 0 : i32
    %c0_i32_1 = arith.constant 0 : i32
    return %c0_i32, %c0_i32_0 : i32, i32
  }
  func.func @transform_1(%arg0: i32) -> (i32, i32) {
    %c0_i32 = arith.constant 0 : i32
    %c0_i32_0 = arith.constant 0 : i32
    %c0_i32_1 = arith.constant 0 : i32
    return %c0_i32, %c0_i32_0 : i32, i32
  }
  func.func @transform_2(%arg0: i32) -> (i32, i32) {
    %c0_i32 = arith.constant 0 : i32
    %c0_i32_0 = arith.constant 0 : i32
    %c0_i32_1 = arith.constant 0 : i32
    return %c0_i32, %c0_i32_0 : i32, i32
  }
  func.func @transform_3(%arg0: i32) -> (i32, i32) {
    %c0_i32 = arith.constant 0 : i32
    %c0_i32_0 = arith.constant 0 : i32
    %c0_i32_1 = arith.constant 0 : i32
    return %c0_i32, %c0_i32_0 : i32, i32
  }
}

</mosaic_0001>

<bundles_post_ra>
// kernel: gem_forward.1
= control target key start
LH: loop header
LB: loop body
LE: loop exit
PB: predicated region body
PF: predicated region fallthrough
CT: control target
= control target key end

     0   :  { %vm21_vm0 = vcmask 261120   ;;  %vm104_vm1 = vcmask 254976   ;;  %s190_s1 = inlined_call_operand.vmem [shape: f32[96,32], index: 1, kind: input, shape index: {}]   ;;  %s191_s2 = inlined_call_operand.vmem [shape: f32[3,32], index: 2, kind: input, shape index: {}]   ;;  %s192_s0 = inlined_call_operand.vmem [shape: f32[2,32], index: 0, kind: input, shape index: {}]   ;;  %s193_s3 = inlined_call_operand.vmem [shape: f32[2,32], index: 3, kind: output, shape index: {}]  }
   0x1   :  { %v18_v0 = vld [vmem:[%s190_s1 + $0x18] sm:$0xff]  ;;  %v17_v1 = vld [vmem:[%s190_s1 + $0x10] sm:$0xff]  ;;  %v16_v3 = vld [vmem:[%s190_s1 + $0x8] sm:$0xff] }
   0x2   :  { %37 = vmatpush.msra.mxu0 %v18_v0  ;;  %v48_v2 = vld [vmem:[%s190_s1 + $0x38] sm:$0xff]  ;;  %v47_v4 = vld [vmem:[%s190_s1 + $0x30] sm:$0xff]  ;;  %v15_v5 = vld [vmem:[%s190_s1] sm:$0xff] }
   0x3   :  { %66 = vmatpush.msra.mxu1 %v48_v2  ;;  %v14_v6 = vld [vmem:[%s192_s0] sm:$0x3]  ;;  %v46_v7 = vld [vmem:[%s190_s1 + $0x28] sm:$0xff]  ;;  %v77_v9 = vld [vmem:[%s190_s1 + $0x58] sm:$0xff] }
   0x4   :  { %38 = vmatpush.msra.mxu0 %v17_v1  ;;  %v45_v8 = vld [vmem:[%s190_s1 + $0x20] sm:$0xff]  ;;  %v76_v10 = vld [vmem:[%s190_s1 + $0x50] sm:$0xff]  ;;  %95 = vmatpush.msra.mxu2 %v77_v9  ;;  %v75_v14 = vld [vmem:[%s190_s1 + $0x48] sm:$0xff] }
   0x5   :  { %67 = vmatpush.msra.mxu1 %v47_v4  ;;  %v113_v11 = vld [vmem:[%s191_s2] ss:$0 sm:$0xff]  ;;  %v114_v16 = vld [vmem:[%s191_s2 + $0x1] ss:$0 sm:$0xff]  ;;  %v115_v19 = vld [vmem:[%s191_s2 + $0x2] ss:$0 sm:$0xff] }
   0x6   :  { %39 = vmatpush.msra.mxu0 %v16_v3  ;;  %96 = vmatpush.msra.mxu2 %v76_v10  ;;  %v74_v15 = vld [vmem:[%s190_s1 + $0x40] sm:$0xff] }
   0x7   :  { %68 = vmatpush.msra.mxu1 %v46_v7 }
   0x8   :  { %40 = vmatpush.msra.mxu0 %v15_v5  ;;  %97 = vmatpush.msra.mxu2 %v75_v14 }
   0x9   :  { %110 = vmatmul.msk.f32.vlgmr.msra.gmra.mxu0 %vm21_vm0, %v14_v6  ;;  %69 = vmatpush.msra.mxu1 %v45_v8 }
   0xa   :  { %98 = vmatpush.msra.mxu2 %v74_v15 }
  0x86   :  { %v42_v12 = vpop.f32.mrf.mxu0 }
  0x87   :  { %v43_v13 = vadd.f32 %v113_v11, %v42_v12 }
  0x89   :  { %111 = vmatmul.msk.f32.vlgmr.msra.gmra.mxu1 %vm21_vm0, %v43_v13 }
 0x106   :  { %v71_v17 = vpop.f32.mrf.mxu1 }
 0x107   :  { %v72_v18 = vadd.f32 %v114_v16, %v71_v17 }
 0x109   :  { %112 = vmatmul.msk.f32.vlgmr.msra.gmra.mxu2 %vm21_vm0, %v72_v18 }
 0x18c   :  { %v100_v20 = vpop.f32.mrf.mxu2 }
 0x18d   :  { %v101_v21 = vadd.f32 %v115_v19, %v100_v20 }
 0x18f   :  { %v103_v22 = vmax.f32 %v101_v21, 0.0 }
 0x191   :  { %105 = vst.msk [vmem:[%s193_s3] sm:$0x3] %vm104_vm1, %v103_v22 }

</bundles_post_ra>
